<compile_context>
chip_gen: v7x
topology: tpu7x:2x2x1
jax: 0.10.0
libtpu: 0.0.40
codegen_flags: <defaults>
</compile_context>

<pallas_src>
import math
from functools import partial

import jax
import jax.numpy as jnp
from jax.experimental import pallas as pl
from jax.experimental.pallas import tpu as pltpu


def _cond_emb_kernel(cond_ref, freqs_ref, out_ref, *, half: int):
    """Batch-major, lane-dense kernel.

    cond_ref:  (TB, 3)          float32  columns = [real_t, pos_x, pos_y]
    freqs_ref: (1, half)        float32  precomputed frequencies (hoisted)
    out_ref:   (TB, 3*2*half)   out dtype; channel c at lanes [c*2*half, (c+1)*2*half)
    """
    freqs = freqs_ref[...]                                  # (1, half)
    out_dim = 2 * half
    # Channel 0 (real_t) and 1 (pos_x): [sin | cos]; channel 2 (pos_y): [cos | sin].
    swap = (False, False, True)
    for c in range(3):                                      # static unroll (3 channels)
        col = cond_ref[:, c:c + 1]                          # (TB, 1) -> lane splat
        args = col * freqs                                  # (TB, half)
        s = jnp.sin(args).astype(out_ref.dtype)
        co = jnp.cos(args).astype(out_ref.dtype)
        lo, hi = (co, s) if swap[c] else (s, co)
        base = c * out_dim
        out_ref[:, base:base + half] = lo                   # static lane-slice stores,
        out_ref[:, base + half:base + out_dim] = hi         # no iota / select / concat


def _pick_batch_tile(B: int, half: int) -> int:
    """Batch tile from a VMEM byte budget (not a hard-coded cliff).

    Targets a ~1 MiB output block: with double buffering plus the per-channel
    sin/cos temporaries (~2.5x the output block) this stays far under v5e's
    16 MiB scoped VMEM (and v6e/v7x's 32 MiB), gives >=2 grid steps for
    writeback overlap whenever the output exceeds ~1 MiB, and lets v7x's two
    TensorCores share the batch axis.
    """
    row_bytes = 3 * (2 * half) * 4                          # one f32 output row
    tb = (1 << 20) // max(row_bytes, 1)
    tb = max(8, min(1024, (tb // 8) * 8))                   # sublane-legal multiple of 8
    if B <= tb:
        return B                                            # full-dim block is always legal
    return tb


def condition_embedding(condition: jax.Array, d_emb: int,
                        max_period: int = 10000,
                        out_dtype=jnp.float32) -> jax.Array:
    """Pallas equivalent of ConditionEmbeddingBlock.forward.

    condition: (B, 3) array -> (B, 3, 2*(d_emb//2)) in `out_dtype`
    (equals (B, 3, d_emb) for even d_emb, matching the torch.cat semantics;
    odd d_emb returns one column narrower, as the source module does).
    """
    assert condition.ndim == 2 and condition.shape[1] == 3, condition.shape
    B = condition.shape[0]
    half = d_emb // 2
    assert half >= 1, d_emb
    out_dim = 2 * half

    # Constant hoisting in the wrapper: POSITIVE exponent, exactly as in the
    # PyTorch source.
    cond_f32 = condition.astype(jnp.float32)                             # (B, 3)
    freqs = jnp.exp((math.log(max_period) / half) *
                    jnp.arange(half, dtype=jnp.float32)).reshape(1, half)

    TB = _pick_batch_tile(B, half)
    grid = (pl.cdiv(B, TB),)

    # Explicit VMEM budget: double-buffered in/out blocks + live temporaries,
    # plus generous headroom; capped at 32 MiB (safe on v5e/v6e/v7x).
    out_itemsize = jnp.dtype(out_dtype).itemsize
    out_block_bytes = TB * 3 * out_dim * out_itemsize
    in_block_bytes = TB * 3 * 4
    tmp_bytes = 3 * TB * half * 4                                        # args, sin, cos
    vmem_limit = 2 * (out_block_bytes + in_block_bytes + half * 4) + tmp_bytes + (2 << 20)
    vmem_limit = int(min(max(vmem_limit, 8 << 20), 32 << 20))

    out_flat = pl.pallas_call(
        partial(_cond_emb_kernel, half=half),
        out_shape=jax.ShapeDtypeStruct((B, 3 * out_dim), out_dtype),
        grid=grid,
        in_specs=[
            pl.BlockSpec((TB, 3), lambda i: (i, 0)),
            pl.BlockSpec((1, half), lambda i: (0, 0)),
        ],
        out_specs=pl.BlockSpec((TB, 3 * out_dim), lambda i: (i, 0)),
        compiler_params=pltpu.CompilerParams(
            dimension_semantics=("parallel",),
            vmem_limit_bytes=vmem_limit),
    )(cond_f32, freqs)

    # Free row-major split of the lane-dense output -> PyTorch (B, 3, d_emb).
    return out_flat.reshape(B, 3, out_dim)


def _reference(condition: jax.Array, d_emb: int, max_period: int = 10000):
    """Pure-JAX transcription of the PyTorch forward, for verification."""
    half = d_emb // 2
    freqs = jnp.exp(math.log(max_period) *
                    jnp.arange(half, dtype=jnp.float32) / half)          # (half,)
    real_t = condition[:, 0:1].astype(jnp.float32)                       # (B, 1)
    pos_x = condition[:, 1:2].astype(jnp.float32)
    pos_y = condition[:, 2:3].astype(jnp.float32)
    a_t = real_t[:, None] * freqs[None]                                  # (B, 1, half)
    a_x = pos_x[:, None] * freqs[None]
    a_y = pos_y[:, None] * freqs[None]
    pe_t = jnp.concatenate([jnp.sin(a_t), jnp.cos(a_t)], axis=-1)
    pe_x = jnp.concatenate([jnp.sin(a_x), jnp.cos(a_x)], axis=-1)
    pe_y = jnp.concatenate([jnp.cos(a_y), jnp.sin(a_y)], axis=-1)
    return jnp.concatenate([pe_t, pe_x, pe_y], axis=1)                   # (B, 3, d_emb)


if __name__ == "__main__":
    key = jax.random.PRNGKey(0)
    B, d_emb = 4, 32
    # condition: (batch, 3) = [real_t, pos_x, pos_y]
    condition = jax.random.normal(key, (B, 3), dtype=jnp.float32) * 2.0

    pe = condition_embedding(condition, d_emb, max_period=10000)
    pe = jax.block_until_ready(pe)

    ref = _reference(condition, d_emb, max_period=10000)
    assert pe.shape == (B, 3, d_emb), pe.shape
    assert pe.dtype == jnp.float32
    assert jnp.allclose(pe, ref, atol=1e-5, rtol=1e-5), \
        float(jnp.max(jnp.abs(pe - ref)))

    # Also exercise a multi-block (ragged last tile) configuration to cover
    # the tiled path; small enough to run instantly on any chip.
    B2, d_emb2 = 2052, 512
    cond2 = jax.random.normal(jax.random.PRNGKey(1), (B2, 3), dtype=jnp.float32)
    pe2 = jax.block_until_ready(condition_embedding(cond2, d_emb2))
    ref2 = _reference(cond2, d_emb2)
    assert pe2.shape == (B2, 3, d_emb2), pe2.shape
    assert jnp.allclose(pe2, ref2, atol=2e-2, rtol=1e-4), \
        float(jnp.max(jnp.abs(pe2 - ref2)))

    print("KERNEL_OK")
</pallas_src>

<mosaic_0001>
module attributes {stable_mosaic.version = 11 : i64} {
  func.func @_cond_emb_kernel(%arg0: i32, %arg1: memref<4x3xf32, #tpu.memory_space<vmem>>, %arg2: memref<1x16xf32, #tpu.memory_space<vmem>>, %arg3: memref<4x96xf32, #tpu.memory_space<vmem>>) attributes {dimension_semantics = [#tpu.dimension_semantics<parallel>], iteration_bounds = array<i64: 1>, scalar_prefetch = 0 : i64, scratch_operands = 0 : i64, tpu.core_type = #tpu.core_type<tc>, window_params = [{transform_indices = @transform_0, window_bounds = array<i64: 4, 3>}, {pipeline_mode = #tpu.pipeline_mode<synchronous>, transform_indices = @transform_1, window_bounds = array<i64: 1, 16>}, {transform_indices = @transform_2, window_bounds = array<i64: 4, 96>}]} {
    %c0 = arith.constant 0 : index
    %c0_0 = arith.constant 0 : index
    %0 = vector.load %arg2[%c0, %c0_0] : memref<1x16xf32, #tpu.memory_space<vmem>>, vector<1x16xf32>
    %c0_1 = arith.constant 0 : index
    %c0_2 = arith.constant 0 : index
    %1 = vector.load %arg1[%c0_1, %c0_2] : memref<4x3xf32, #tpu.memory_space<vmem>>, vector<4x1xf32>
    %2 = vector.broadcast %1 : vector<4x1xf32> to vector<4x16xf32>
    %3 = vector.broadcast %0 : vector<1x16xf32> to vector<4x16xf32>
    %4 = arith.mulf %2, %3 : vector<4x16xf32>
    %5 = math.sin %4 : vector<4x16xf32>
    %6 = math.cos %4 : vector<4x16xf32>
    %c0_3 = arith.constant 0 : index
    %c0_4 = arith.constant 0 : index
    %7 = vector.load %arg3[%c0_3, %c0_4] : memref<4x96xf32, #tpu.memory_space<vmem>>, vector<4x16xf32>
    tpu.vector_store %arg3[%c0_3, %c0_4], %5 {strides = array<i32>} : memref<4x96xf32, #tpu.memory_space<vmem>>, vector<4x16xf32>,
    %c0_5 = arith.constant 0 : index
    %c16 = arith.constant 16 : index
    %8 = vector.load %arg3[%c0_5, %c16] : memref<4x96xf32, #tpu.memory_space<vmem>>, vector<4x16xf32>
    tpu.vector_store %arg3[%c0_5, %c16], %6 {strides = array<i32>} : memref<4x96xf32, #tpu.memory_space<vmem>>, vector<4x16xf32>,
    %c0_6 = arith.constant 0 : index
    %c1 = arith.constant 1 : index
    %9 = vector.load %arg1[%c0_6, %c1] : memref<4x3xf32, #tpu.memory_space<vmem>>, vector<4x1xf32>
    %10 = vector.broadcast %9 : vector<4x1xf32> to vector<4x16xf32>
    %11 = vector.broadcast %0 : vector<1x16xf32> to vector<4x16xf32>
    %12 = arith.mulf %10, %11 : vector<4x16xf32>
    %13 = math.sin %12 : vector<4x16xf32>
    %14 = math.cos %12 : vector<4x16xf32>
    %c0_7 = arith.constant 0 : index
    %c32 = arith.constant 32 : index
    %15 = vector.load %arg3[%c0_7, %c32] : memref<4x96xf32, #tpu.memory_space<vmem>>, vector<4x16xf32>
    tpu.vector_store %arg3[%c0_7, %c32], %13 {strides = array<i32>} : memref<4x96xf32, #tpu.memory_space<vmem>>, vector<4x16xf32>,
    %c0_8 = arith.constant 0 : index
    %c48 = arith.constant 48 : index
    %16 = vector.load %arg3[%c0_8, %c48] : memref<4x96xf32, #tpu.memory_space<vmem>>, vector<4x16xf32>
    tpu.vector_store %arg3[%c0_8, %c48], %14 {strides = array<i32>} : memref<4x96xf32, #tpu.memory_space<vmem>>, vector<4x16xf32>,
    %c0_9 = arith.constant 0 : index
    %c2 = arith.constant 2 : index
    %17 = vector.load %arg1[%c0_9, %c2] : memref<4x3xf32, #tpu.memory_space<vmem>>, vector<4x1xf32>
    %18 = vector.broadcast %17 : vector<4x1xf32> to vector<4x16xf32>
    %19 = vector.broadcast %0 : vector<1x16xf32> to vector<4x16xf32>
    %20 = arith.mulf %18, %19 : vector<4x16xf32>
    %21 = math.sin %20 : vector<4x16xf32>
    %22 = math.cos %20 : vector<4x16xf32>
    %c0_10 = arith.constant 0 : index
    %c64 = arith.constant 64 : index
    %23 = vector.load %arg3[%c0_10, %c64] : memref<4x96xf32, #tpu.memory_space<vmem>>, vector<4x16xf32>
    tpu.vector_store %arg3[%c0_10, %c64], %22 {strides = array<i32>} : memref<4x96xf32, #tpu.memory_space<vmem>>, vector<4x16xf32>,
    %c0_11 = arith.constant 0 : index
    %c80 = arith.constant 80 : index
    %24 = vector.load %arg3[%c0_11, %c80] : memref<4x96xf32, #tpu.memory_space<vmem>>, vector<4x16xf32>
    tpu.vector_store %arg3[%c0_11, %c80], %21 {strides = array<i32>} : memref<4x96xf32, #tpu.memory_space<vmem>>, vector<4x16xf32>,
    return
  }
  func.func @transform_0(%arg0: i32) -> (i32, i32) {
    %c0_i32 = arith.constant 0 : i32
    %c0_i32_0 = arith.constant 0 : i32
    return %arg0, %c0_i32 : i32, i32
  }
  func.func @transform_1(%arg0: i32) -> (i32, i32) {
    %c0_i32 = arith.constant 0 : i32
    %c0_i32_0 = arith.constant 0 : i32
    %c0_i32_1 = arith.constant 0 : i32
    return %c0_i32, %c0_i32_0 : i32, i32
  }
  func.func @transform_2(%arg0: i32) -> (i32, i32) {
    %c0_i32 = arith.constant 0 : i32
    %c0_i32_0 = arith.constant 0 : i32
    return %arg0, %c0_i32 : i32, i32
  }
}

</mosaic_0001>

<bundles_post_ra>
// kernel: tpu_custom_call.1
= control target key start
LH: loop header
LB: loop body
LE: loop exit
PB: predicated region body
PF: predicated region fallthrough
CT: control target
= control target key end

     0   :  { %7 = vsyncpa [#allocation3], 0  ;;  %s1073_s0 = inlined_call_operand.hbm [shape: f32[4,3], index: 0, kind: input, shape index: {}]   ;;  %s1074_s1 = inlined_call_operand.vmem [shape: f32[1,16], index: 1, kind: input, shape index: {}]   ;;  %s1075_s2 = inlined_call_operand.hbm [shape: f32[4,96], index: 2, kind: output, shape index: {}]  }
   0x1   :  { %8 = vsyncpa [#allocation4], 0  ;;  %s837_s9 = smov [#allocation2]   ;;  %s789_s13 = scalar_lea.hbm %s1073_s0, 64 }
   0x2   :  { %s15_s10 = sshll.u32 %s837_s9, 4  ;;  %p790_p0 = scmp.ne.s32.totalorder %s1073_s0, %s789_s13  ;;  %s16_s10 = int_to_ptr.vmem [resolvable:$true] %s15_s10 }
   0x3   :  { %p793_p1 = scmp.lt.u32.totalorder %s789_s13, %s1073_s0 }
   0x5   :  { %p795_p2 = pnand %p793_p1, %p790_p0 }
   0x7   :  { %798 = shalt.err (!%p795_p2)
}
   0x8   :  { %s799_s18 = scalar_lea.vmem %s16_s10, 64  ;;  %p804_p4 = scmp.lt.s32.totalorder %s16_s10, %s16_s10 }
   0x9   :  { %p800_p3 = scmp.ne.s32.totalorder %s16_s10, %s799_s18  ;;  %p805_p5 = scmp.lt.s32.totalorder %s799_s18, %s799_s18 }
   0xb   :  { %p806_p6 = por %p805_p5, %p804_p4 }
   0xd   :  { %p807_p7 = pnand %p806_p6, %p800_p3 }
   0xf   :  { %810 = shalt.err (!%p807_p7)
}
  0x10   :  { %18 = dma.hbm_to_vmem [thread:$0]  %s1073_s0, 64, %s16_s10, [#allocation3]  }
  0x11   :  { %833 = dma.done.wait [#allocation3], 64  }
  0x12   :  { %834 = vsyncadd [#allocation3], 4294967232  ;;  %v838_v0 = vmov 2   ;;  %v839_v1 = vmov 0   ;;  %v479_v2 = vld [vmem:[#allocation2] sm:$0xf] }
  0x13   :  { %775 = vset.pattern.permute.xlu1 %v838_v0  ;;  %773 = vset.pattern.permute.xlu0 %v839_v1  ;;  %v25_v3 = vld [vmem:[#allocation2] sm:$0xf]  ;;  %v840_v5 = vmov 1   ;;  %v841_v40 = vmov 683565275   ;;  %s847_s0 = smov 16  }
  0x14   :  { %482 = vperm.xlu1 %775, %v479_v2   ;;  %28 = vperm.xlu0 %773, %v25_v3   ;;  %v253_v4 = vld [vmem:[#allocation2] sm:$0xf]  ;;  %v842_v42 = vmov 2475754826   ;;  %v843_v44 = vmov 2131351028  }
  0x15   :  { %v720_v6 = vld [vmem:[%s1074_s1] ss:$0 sm:$0xff]  ;;  %v844_v46 = vmov 2102212464   ;;  %v845_v48 = vmov 920167782  }
  0x16   :  { %v846_v56 = vmov 1326507024   ;;  %s848_s1 = smov 48   ;;  %s849_s23 = smov 32  }
  0x17   :  { %s850_s24 = smov 80   ;;  %s851_s25 = smov 64  }
  0x18   :  { %774 = vset.pattern.permute.xlu0 %v840_v5  ;;  %s852_s26 = smov [#allocation5]  }
  0x19   :  { %256 = vperm.xlu0 %774, %v253_v4   ;;  %s711_s27 = sshll.u32 %s852_s26, 4  ;;  %s712_s27 = int_to_ptr.vmem [resolvable:$true] %s711_s27 }
  0x1a   :  { %s811_s28 = scalar_lea.vmem %s712_s27, 64  ;;  %p816_p9 = scmp.lt.s32.totalorder %s712_s27, %s712_s27 }
  0x1b   :  { %p812_p8 = scmp.ne.s32.totalorder %s712_s27, %s811_s28  ;;  %p817_p10 = scmp.lt.s32.totalorder %s811_s28, %s811_s28 }
  0x1d   :  { %776 = vset.pattern.permute.xlu0 %v838_v0  ;;  %p818_p11 = por %p817_p10, %p816_p9 }
  0x1f   :  { %p819_p12 = pnand %p818_p11, %p812_p8 }
  0x93   :  { %v483_v7 = vpop.permute.xlu1 %482  ;;  %v29_v8 = vpop.permute.xlu0 %28 }
  0x94   :  { %v883_v9 = vmul.f32 %v720_v6, %v483_v7  ;;  %v885_v10 = vmul.f32 %v720_v6, %v29_v8 }
  0x96   :  { %v486_v11 = vand.u32 2147483647, %v883_v9  ;;  %v489_v12 = vand.u32 2139095040, %v883_v9  ;;  %v38_v13 = vand.u32 2147483647, %v885_v10  ;;  %v41_v14 = vand.u32 2139095040, %v885_v10 }
  0x98   :  { %v490_v15 = vshrl.u32 %v489_v12, 23  ;;  %v257_v16 = vpop.permute.xlu0 %256  ;;  %v493_v17 = vand.u32 8388607, %v486_v11  ;;  %v42_v18 = vshrl.u32 %v41_v14, 23  ;;  %v45_v19 = vand.u32 8388607, %v38_v13 }
  0x99   :  { %v895_v20 = vmul.f32 %v720_v6, %v257_v16 }
  0x9a   :  { %v737_v21 = vadd.s32 4294967169, %v490_v15  ;;  %v721_v22 = vadd.s32 4294967169, %v42_v18  ;;  %v494_v25 = vor.u32 8388608, %v493_v17  ;;  %v46_v26 = vor.u32 8388608, %v45_v19 }
  0x9b   :  { %v263_v23 = vand.u32 2139095040, %v895_v20  ;;  %v260_v34 = vand.u32 2147483647, %v895_v20 }
  0x9c   :  { %v496_v24 = vadd.s32 1, %v737_v21  ;;  %v48_v27 = vadd.s32 1, %v721_v22  ;;  %v899_v35 = vshll.u32 %v494_v25, 8  ;;  %v903_v38 = vshll.u32 %v46_v26, 8 }
  0x9d   :  { %v264_v28 = vshrl.u32 %v263_v23, 23 }
  0x9e   :  { %vm497_vm0 = vcmp.gt.s32.totalorder %v496_v24, 0  ;;  %vm49_vm1 = vcmp.gt.s32.totalorder %v48_v27, 0 }
  0x9f   :  { %v498_v29 = vsel %vm497_vm0, %v496_v24, 0  ;;  %v729_v30 = vadd.s32 4294967169, %v264_v28  ;;  %v50_v33 = vsel %vm49_vm1, %v48_v27, 0 }
  0xa0   :  { %v499_v31 = vshrl.u32 %v498_v29, 5  ;;  %v500_v32 = vand.u32 31, %v498_v29  ;;  %v901_v36 = vshrl.u32 %v50_v33, 5  ;;  %v52_v37 = vand.u32 31, %v50_v33 }
  0xa1   :  { %v910_v50 = vadd.s32 1, %v729_v30 }
  0xa2   :  { %v501_v39 = vsub.s32 32, %v500_v32  ;;  %v503_v41 = vshll.u32 %v841_v40, %v500_v32  ;;  %v506_v43 = vshll.u32 %v842_v42, %v500_v32  ;;  %v509_v45 = vshll.u32 %v843_v44, %v500_v32 }
  0xa3   :  { %v512_v47 = vshll.u32 %v844_v46, %v500_v32  ;;  %v515_v49 = vshll.u32 %v845_v48, %v500_v32  ;;  %vm518_vm2 = vcmp.lt.s32.totalorder %v499_v31, 1  ;;  %vm520_vm3 = vcmp.lt.s32.totalorder %v499_v31, 3 }
  0xa4   :  { %v502_v51 = vshrl.u32 %v841_v40, %v501_v39  ;;  %v504_v52 = vshrl.u32 %v842_v42, %v501_v39  ;;  %v507_v53 = vshrl.u32 %v843_v44, %v501_v39  ;;  %v510_v54 = vshrl.u32 %v844_v46, %v501_v39 }
  0xa5   :  { %v513_v55 = vshrl.u32 %v845_v48, %v501_v39  ;;  %v516_v57 = vshrl.u32 %v846_v56, %v501_v39  ;;  %vm521_vm4 = vcmp.lt.s32.totalorder %v499_v31, 4  ;;  %v53_v61 = vsub.s32 32, %v52_v37 }
  0xa6   :  { %v505_v58 = vor.u32 %v504_v52, %v503_v41  ;;  %v508_v59 = vor.u32 %v507_v53, %v506_v43  ;;  %v511_v60 = vor.u32 %v510_v54, %v509_v45  ;;  %vm519_vm5 = vcmp.lt.s32.totalorder %v499_v31, 2 }
  0xa7   :  { %v514_v62 = vor.u32 %v513_v55, %v512_v47  ;;  %v517_v63 = vor.u32 %v516_v57, %v515_v49  ;;  %v55_v0 = vshll.u32 %v841_v40, %v52_v37  ;;  %v58_v8 = vshll.u32 %v842_v42, %v52_v37 }
  0xa8   :  { %v522_v1 = vsel %vm518_vm2, %v502_v51, %v505_v58  ;;  %v523_v2 = vsel %vm521_vm4, %v511_v60, 2102212464  ;;  %v526_v3 = vsel %vm518_vm2, %v505_v58, %v508_v59  ;;  %v530_v4 = vsel %vm518_vm2, %v508_v59, %v511_v60 }
  0xa9   :  { %v524_v5 = vsel %vm520_vm3, %v508_v59, %v523_v2  ;;  %v527_v6 = vsel %vm521_vm4, %v514_v62, 920167782  ;;  %v531_v7 = vsel %vm521_vm4, %v517_v63, 1326507024  ;;  %v54_v15 = vshrl.u32 %v841_v40, %v53_v61 }
  0xaa   :  { %v528_v12 = vsel %vm520_vm3, %v511_v60, %v527_v6  ;;  %v532_v14 = vsel %vm520_vm3, %v514_v62, %v531_v7  ;;  %v56_v16 = vshrl.u32 %v842_v42, %v53_v61  ;;  %v525_v17 = vsel %vm519_vm5, %v522_v1, %v524_v5 }
  0xab   :  { %v529_v18 = vsel %vm519_vm5, %v526_v3, %v528_v12  ;;  %v533_v19 = vsel %vm519_vm5, %v530_v4, %v532_v14  ;;  %v59_v21 = vshrl.u32 %v843_v44, %v53_v61  ;;  %v61_v28 = vshll.u32 %v843_v44, %v52_v37 }
  0xac   :  { %v933_v22 = vmul.u32.u64.low %v899_v35, %v533_v19  ;;  %v934_v23 = vmul.u32.u64.high %v899_v35, %v533_v19, %v933_v22  ;;  %v937_v24 = vmul.u32.u64.low %v899_v35, %v529_v18  ;;  %v938_v25 = vmul.u32.u64.high %v899_v35, %v529_v18, %v937_v24 }
  0xad   :  { %v57_v26 = vor.u32 %v56_v16, %v55_v0  ;;  %v60_v27 = vor.u32 %v59_v21, %v58_v8  ;;  %v62_v29 = vshrl.u32 %v844_v46, %v53_v61  ;;  %v541_v30 = vmul.u32 %v899_v35, %v525_v17 }
  0xae   :  { %v64_v31 = vshll.u32 %v844_v46, %v52_v37  ;;  %v65_v32 = vshrl.u32 %v845_v48, %v53_v61  ;;  %v68_v33 = vshrl.u32 %v846_v56, %v53_v61  ;;  %v67_v41 = vshll.u32 %v845_v48, %v52_v37 }
  0xaf   :  { %v63_v39 = vor.u32 %v62_v29, %v61_v28  ;;  %vm70_vm6 = vcmp.lt.s32.totalorder %v901_v36, 1  ;;  %vm71_vm7 = vcmp.lt.s32.totalorder %v901_v36, 2  ;;  %vm543_vm8 = vc.u32 %v934_v23, %v937_v24 }
  0xb0   :  { %v544_v43 = vadd.s32 1, %v938_v25  ;;  %v66_v45 = vor.u32 %v65_v32, %v64_v31  ;;  %vm72_vm9 = vcmp.lt.s32.totalorder %v901_v36, 3  ;;  %v69_v35 = vor.u32 %v68_v33, %v67_v41 }
  0xb1   :  { %vm73_vm10 = vcmp.lt.s32.totalorder %v901_v36, 4  ;;  %v74_v47 = vsel %vm70_vm6, %v54_v15, %v57_v26  ;;  %v78_v49 = vsel %vm70_vm6, %v57_v26, %v60_v27  ;;  %v82_v53 = vsel %vm70_vm6, %v60_v27, %v63_v39 }
  0xb2   :  { %v545_v51 = vsel %vm543_vm8, %v544_v43, %v938_v25  ;;  %v75_v37 = vsel %vm73_vm10, %v63_v39, 2102212464  ;;  %v79_v52 = vsel %vm73_vm10, %v66_v45, 920167782  ;;  %v83_v58 = vsel %vm73_vm10, %v69_v35, 1326507024 }
  0xb3   :  { %v546_v54 = vadd.s32 %v545_v51, %v541_v30  ;;  %v76_v55 = vsel %vm72_vm9, %v60_v27, %v75_v37  ;;  %v80_v57 = vsel %vm72_vm9, %v63_v39, %v79_v52  ;;  %v84_v60 = vsel %vm72_vm9, %v66_v45, %v83_v58 }
  0xb4   :  { %v81_v59 = vsel %vm71_vm7, %v78_v49, %v80_v57  ;;  %v267_v61 = vand.u32 8388607, %v260_v34  ;;  %vm271_vm11 = vcmp.gt.s32.totalorder %v910_v50, 0  ;;  %v85_v63 = vsel %vm71_vm7, %v82_v53, %v84_v60 }
  0xb5   :  { %v547_v62 = vadd.s32 536870912, %v546_v54  ;;  %v964_v0 = vmul.u32.u64.low %v903_v38, %v81_v59  ;;  %v965_v1 = vmul.u32.u64.high %v903_v38, %v81_v59, %v964_v0  ;;  %v77_v2 = vsel %vm71_vm7, %v74_v47, %v76_v55 }
  0xb6   :  { %v971_v3 = vmul.u32.u64.low %v903_v38, %v85_v63  ;;  %v972_v4 = vmul.u32.u64.high %v903_v38, %v85_v63, %v971_v3  ;;  %v272_v5 = vsel %vm271_vm11, %v910_v50, 0  ;;  %v268_v8 = vor.u32 8388608, %v267_v61 }
  0xb7   :  { %v975_v6 = vshrl.u32 %v547_v62, 30  ;;  %v274_v7 = vand.u32 31, %v272_v5  ;;  %v93_v14 = vmul.u32 %v903_v38, %v77_v2  ;;  %v96_v15 = vadd.s32 1, %v965_v1 }
  0xb8   :  { %vm95_vm12 = vc.u32 %v972_v4, %v964_v0  ;;  %v273_v36 = vshrl.u32 %v272_v5, 5  ;;  %v308_v45 = vshll.u32 %v268_v8, 8  ;;  %vm40_vm4 = vcmp.lt.s32.totalorder %v885_v10, 0 }
  0xb9   :  { %v549_v12 = vshll.u32 %v975_v6, 30  ;;  %v275_v16 = vsub.s32 32, %v274_v7  ;;  %v277_v17 = vshll.u32 %v841_v40, %v274_v7  ;;  %v280_v18 = vshll.u32 %v842_v42, %v274_v7 }
  0xba   :  { %v97_v19 = vsel %vm95_vm12, %v96_v15, %v965_v1  ;;  %v283_v22 = vshll.u32 %v843_v44, %v274_v7  ;;  %v286_v27 = vshll.u32 %v844_v46, %v274_v7  ;;  %v289_v31 = vshll.u32 %v845_v48, %v274_v7 }
  0xbb   :  { %v984_v50 = vsub.s32 %v546_v54, %v549_v12  ;;  %v278_v21 = vshrl.u32 %v842_v42, %v275_v16  ;;  %v98_v38 = vadd.s32 %v97_v19, %v93_v14  ;;  %v281_v25 = vshrl.u32 %v843_v44, %v275_v16 }
  0xbc   :  { %v284_v26 = vshrl.u32 %v844_v46, %v275_v16  ;;  %v287_v30 = vshrl.u32 %v845_v48, %v275_v16  ;;  %v290_v42 = vshrl.u32 %v846_v56, %v275_v16  ;;  %v276_v44 = vshrl.u32 %v841_v40, %v275_v16 }
  0xbd   :  { %v552_v28 = vsub.s32 0, %v984_v50  ;;  %v279_v29 = vor.u32 %v278_v21, %v277_v17  ;;  %v99_v32 = vadd.s32 536870912, %v98_v38  ;;  %v282_v33 = vor.u32 %v281_v25, %v280_v18 }
  0xbe   :  { %v285_v39 = vor.u32 %v284_v26, %v283_v22  ;;  %v288_v43 = vor.u32 %v287_v30, %v286_v27  ;;  %v291_v46 = vor.u32 %v290_v42, %v289_v31  ;;  %vm292_vm13 = vcmp.lt.s32.totalorder %v273_v36, 1 }
  0xbf   :  { %v738_v41 = vmin.u32 %v552_v28, %v984_v50  ;;  %v998_v35 = vshrl.u32 %v99_v32, 30  ;;  %vm295_vm14 = vcmp.lt.s32.totalorder %v273_v36, 4  ;;  %vm293_vm15 = vcmp.lt.s32.totalorder %v273_v36, 2 }
  0xc0   :  { %v297_v49 = vsel %vm295_vm14, %v285_v39, 2102212464  ;;  %v300_v48 = vsel %vm292_vm13, %v279_v29, %v282_v33  ;;  %vm294_vm0 = vcmp.lt.s32.totalorder %v273_v36, 3  ;;  %v301_v37 = vsel %vm295_vm14, %v288_v43, 920167782 }
  0xc1   :  { %v554_v47 = vclz %v738_v41  ;;  %v101_v51 = vshll.u32 %v998_v35, 30  ;;  %v304_v56 = vsel %vm292_vm13, %v282_v33, %v285_v39  ;;  %v296_v53 = vsel %vm292_vm13, %v276_v44, %v279_v29 }
  0xc2   :  { %v302_v54 = vsel %vm294_vm0, %v285_v39, %v301_v37  ;;  %v305_v40 = vsel %vm295_vm14, %v291_v46, 1326507024  ;;  %v298_v57 = vsel %vm294_vm0, %v282_v33, %v297_v49  ;;  %v94_v22 = vadd.s32 %v964_v0, %v972_v4 }
  0xc3   :  { %v739_v52 = vadd.s32 4294967294, %v554_v47  ;;  %v102_v55 = vsub.s32 %v98_v38, %v101_v51  ;;  %v303_v58 = vsel %vm293_vm15, %v300_v48, %v302_v54  ;;  %v306_v59 = vsel %vm294_vm0, %v288_v43, %v305_v40 }
  0xc4   :  { %v307_v60 = vsel %vm293_vm15, %v304_v56, %v306_v59  ;;  %v1003_v61 = vmul.u32.u64.low %v308_v45, %v303_v58  ;;  %v1004_v62 = vmul.u32.u64.high %v308_v45, %v303_v58, %v1003_v61  ;;  %v299_v5 = vsel %vm293_vm15, %v296_v53, %v298_v57 }
  0xc5   :  { %vm740_vm1 = vcmp.lt.s32.totalorder %v739_v52, 0  ;;  %v104_v1 = vsub.s32 0, %v102_v55  ;;  %v1006_v2 = vmul.u32.u64.low %v308_v45, %v307_v60  ;;  %v1007_v3 = vmul.u32.u64.high %v308_v45, %v307_v60, %v1006_v2 }
  0xc6   :  { %v557_v63 = vsel %vm740_vm1, 0, %v739_v52  ;;  %v318_v12 = vadd.s32 1, %v1004_v62  ;;  %v315_v15 = vmul.u32 %v308_v45, %v299_v5  ;;  %v542_v28 = vadd.s32 %v937_v24, %v934_v23 }
  0xc7   :  { %v722_v7 = vmin.u32 %v104_v1, %v102_v55  ;;  %v562_v8 = vsub.s32 4294967266, %v557_v63  ;;  %vm317_vm2 = vc.u32 %v1007_v3, %v1003_v61  ;;  %v558_v38 = vsub.s32 32, %v557_v63 }
  0xc8   :  { %v319_v16 = vsel %vm317_vm2, %v318_v12, %v1004_v62  ;;  %v559_v0 = vshll.u32 %v984_v50, %v557_v63  ;;  %v124_v23 = vsub.s32 4, %v998_v35  ;;  %vm39_vm6 = vcmp.le.f32.partialorder %v38_v13, 0.7853982 }
  0xc9   :  { %v106_v14 = vclz %v722_v7  ;;  %v320_v18 = vadd.s32 %v319_v16, %v315_v15  ;;  %v563_v19 = vadd.s32 127, %v562_v8  ;;  %v560_v39 = vshrl.u32 %v542_v28, %v558_v38 }
  0xca   :  { %v125_v54 = vsel %vm40_vm4, %v124_v23, %v998_v35  ;;  %v572_v7 = vsub.s32 4, %v975_v6  ;;  %vm488_vm7 = vcmp.lt.s32.totalorder %v883_v9, 0  ;;  %vm487_vm8 = vcmp.le.f32.partialorder %v486_v11, 0.7853982 }
  0xcb   :  { %v723_v17 = vadd.s32 4294967294, %v106_v14  ;;  %v321_v21 = vadd.s32 536870912, %v320_v18  ;;  %v564_v29 = vshll.u32 %v563_v19, 23  ;;  %v561_v46 = vor.u32 %v560_v39, %v559_v0 }
  0xcc   :  { %v127_v62 = vsel %vm39_vm6, 0, %v125_v54  ;;  %v573_v15 = vsel %vm488_vm7, %v572_v7, %v975_v6  ;;  %vm262_vm9 = vcmp.lt.s32.totalorder %v895_v20, 0  ;;  %vm245_vm10 = vcmask 125952  }
  0xcd   :  { %vm724_vm3 = vcmp.lt.s32.totalorder %v723_v17, 0  ;;  %v1015_v27 = vshrl.u32 %v321_v21, 30  ;;  %v565_v4 = vor.u32 4788187, %v564_v29  ;;  %v568_v56 = vcvt.s32.f32 %v561_v46 }
  0xce   :  { %v109_v36 = vsel %vm724_vm3, 0, %v723_v17  ;;  %v131_v5 = vadd.s32 3, %v127_v62  ;;  %vm1036_vm11 = vcmp.le.f32.partialorder %v260_v34, 0.7853982  ;;  %vm130_vm2 = vweird.f32 %v885_v10 }
  0xcf   :  { %v110_v25 = vsub.s32 32, %v109_v36  ;;  %v114_v26 = vsub.s32 4294967266, %v109_v36  ;;  %v111_v30 = vshll.u32 %v102_v55, %v109_v36  ;;  %v323_v33 = vshll.u32 %v1015_v27, 30 }
  0xd0   :  { %v566_v24 = vand.u32 2147483647, %v565_v4  ;;  %v316_v55 = vadd.s32 %v1003_v61, %v1007_v3  ;;  %v235_v3 = vand.u32 3, %v127_v62  ;;  %v132_v14 = vand.u32 3, %v131_v5 }
  0xd1   :  { %v112_v31 = vshrl.u32 %v94_v22, %v110_v25  ;;  %v115_v32 = vadd.s32 127, %v114_v26  ;;  %v324_v44 = vsub.s32 %v320_v18, %v323_v33  ;;  %v346_v6 = vsub.s32 4, %v1015_v27 }
  0xd2   :  { %v569_v50 = vmul.f32 %v568_v56, %v566_v24  ;;  %vm236_vm12 = vcmp.lt.s32.totalorder %v235_v3, 2  ;;  %v575_v36 = vsel %vm487_vm8, 0, %v573_v15  ;;  %vm133_vm13 = vcmp.lt.s32.totalorder %v132_v14, 2 }
  0xd3   :  { %v113_v42 = vor.u32 %v112_v31, %v111_v30  ;;  %v116_v41 = vshll.u32 %v115_v32, 23  ;;  %v326_v45 = vsub.s32 0, %v324_v44  ;;  %vm137_vm14 = vcmp.eq.s32.totalorder %v132_v14, 2 }
  0xd4   :  { %v570_v63 = vxor.u32 2147483648, %v569_v50  ;;  %vm237_vm15 = vcmp.eq.s32.totalorder %v235_v3, 0  ;;  %vm240_vm0 = vcmp.eq.s32.totalorder %v235_v3, 2  ;;  %vm134_vm1 = vcmp.eq.s32.totalorder %v132_v14, 0 }
  0xd5   :  { %v117_v43 = vor.u32 4788187, %v116_v41  ;;  %v120_v49 = vcvt.s32.f32 %v113_v42  ;;  %v730_v48 = vmin.u32 %v326_v45, %v324_v44  ;;  %v347_v32 = vsel %vm262_vm9, %v346_v6, %v1015_v27 }
  0xd6   :  { %v571_v13 = vsel %vm488_vm7, %v570_v63, %v569_v50  ;;  %v349_v27 = vsel %vm1036_vm11, 0, %v347_v32 }
  0xd7   :  { %v118_v47 = vand.u32 2147483647, %v117_v43  ;;  %v328_v37 = vclz %v730_v48  ;;  %v574_v19 = vsel %vm487_vm8, %v883_v9, %v571_v13  ;;  %v353_v0 = vadd.s32 3, %v349_v27 }
  0xd8   :  { %v457_v45 = vand.u32 3, %v349_v27 }
  0xd9   :  { %v121_v51 = vmul.f32 %v120_v49, %v118_v47  ;;  %v731_v53 = vadd.s32 4294967294, %v328_v37  ;;  %v683_v47 = vand.u32 3, %v575_v36  ;;  %v354_v49 = vand.u32 3, %v353_v0 }
  0xda   :  { %vm462_vm7 = vcmp.eq.s32.totalorder %v457_v45, 2 }
  0xdb   :  { %v122_v52 = vxor.u32 2147483648, %v121_v51  ;;  %vm732_vm5 = vcmp.lt.s32.totalorder %v731_v53, 0  ;;  %vm685_vm8 = vcmp.eq.s32.totalorder %v683_v47, 0 }
  0xdc   :  { %v331_v57 = vsel %vm732_vm5, 0, %v731_v53  ;;  %vm459_vm5 = vcmp.eq.s32.totalorder %v457_v45, 0 }
  0xdd   :  { %v123_v40 = vsel %vm40_vm4, %v122_v52, %v121_v51  ;;  %v332_v59 = vsub.s32 32, %v331_v57  ;;  %v336_v60 = vsub.s32 4294967266, %v331_v57  ;;  %v333_v1 = vshll.u32 %v324_v44, %v331_v57 }
  0xde   :  { %v126_v58 = vsel %vm39_vm6, %v885_v10, %v123_v40  ;;  %v579_v10 = vadd.s32 3, %v575_v36  ;;  %vm458_vm4 = vcmp.lt.s32.totalorder %v457_v45, 2 }
  0xdf   :  { %777 = vcosq.f32 %v126_v58  ;;  %v334_v2 = vshrl.u32 %v316_v55, %v332_v59  ;;  %v337_v35 = vadd.s32 127, %v336_v60 }
  0xe0   :  { %779 = vsinq.f32 %v126_v58  ;;  %v580_v4 = vand.u32 3, %v579_v10 }
  0xe1   :  { %v335_v8 = vor.u32 %v334_v2, %v333_v1  ;;  %v338_v12 = vshll.u32 %v337_v35, 23  ;;  %781 = vcosq.f32 %v574_v19 }
  0xe2   :  { %783 = vsinq.f32 %v574_v19  ;;  %vm582_vm3 = vcmp.eq.s32.totalorder %v580_v4, 0  ;;  %vm585_vm6 = vcmp.eq.s32.totalorder %v580_v4, 2 }
  0xe3   :  { %v339_v61 = vor.u32 4788187, %v338_v12  ;;  %v342_v17 = vcvt.s32.f32 %v335_v8 }
  0xe5   :  { %v340_v16 = vand.u32 2147483647, %v339_v61 }
  0xe7   :  { %v343_v22 = vmul.f32 %v342_v17, %v340_v16 }
  0xe9   :  { %v778_v21 = vpop.eup %777  ;;  %v344_v25 = vxor.u32 2147483648, %v343_v22 }
  0xea   :  { %v780_v38 = vpop.eup %779  ;;  %v138_v11 = vxor.u32 2147483648, %v778_v21 }
  0xeb   :  { %v135_v26 = vxor.u32 2147483648, %v780_v38  ;;  %v345_v29 = vsel %vm262_vm9, %v344_v25, %v343_v22  ;;  %v782_v43 = vpop.eup %781  ;;  %vm688_vm9 = vcmp.eq.s32.totalorder %v683_v47, 2 }
  0xec   :  { %v242_v34 = vsel %vm240_vm0, %v138_v11, %v780_v38  ;;  %v139_v28 = vsel %vm137_vm14, %v138_v11, %v780_v38  ;;  %v348_v42 = vsel %vm1036_vm11, %v895_v20, %v345_v29  ;;  %v784_v46 = vpop.eup %783  ;;  %v586_v48 = vxor.u32 2147483648, %v782_v43 }
  0xed   :  { %v239_v30 = vsel %vm237_vm15, %v778_v21, %v135_v26  ;;  %v136_v31 = vsel %vm134_vm1, %v778_v21, %v135_v26  ;;  %785 = vcosq.f32 %v348_v42  ;;  %v583_v24 = vxor.u32 2147483648, %v784_v46 }
  0xee   :  { %v243_v33 = vsel %vm236_vm12, %v239_v30, %v242_v34  ;;  %v140_v39 = vsel %vm133_vm13, %v136_v31, %v139_v28  ;;  %787 = vsinq.f32 %v348_v42  ;;  %vm356_vm11 = vcmp.eq.s32.totalorder %v354_v49, 0 }
  0xef   :  { %v244_v41 = vsel %vm130_vm2, nan, %v243_v33  ;;  %v141_v44 = vsel %vm130_vm2, nan, %v140_v39  ;;  %vm359_vm12 = vcmp.eq.s32.totalorder %v354_v49, 2  ;;  %v587_v54 = vsel %vm585_vm6, %v586_v48, %v784_v46 }
  0xf0   :  { %248 = vrot.lane.b32.xlu1 %v244_v41, %s847_s0  ;;  %246 = vst.msk [vmem:[#allocation5] sm:$0xf] %vm245_vm10, %v141_v44  ;;  %vm355_vm10 = vcmp.lt.s32.totalorder %v354_v49, 2  ;;  %v690_v50 = vsel %vm688_vm9, %v586_v48, %v784_v46  ;;  %v584_v57 = vsel %vm582_vm3, %v782_v43, %v583_v24  ;;  %v687_v58 = vsel %vm685_vm8, %v782_v43, %v583_v24 }
  0xf1   :  { %vm352_vm13 = vweird.f32 %v895_v20  ;;  %vm581_vm14 = vcmp.lt.s32.totalorder %v580_v4, 2  ;;  %vm684_vm15 = vcmp.lt.s32.totalorder %v683_v47, 2  ;;  %vm578_vm0 = vweird.f32 %v883_v9 }
  0xf2   :  { %v588_v1 = vsel %vm581_vm14, %v584_v57, %v587_v54  ;;  %v691_v2 = vsel %vm684_vm15, %v687_v58, %v690_v50  ;;  %vm251_vm1 = vcmask 257152   ;;  %vm471_vm2 = vcmask 388352  }
  0xf3   :  { %v589_v35 = vsel %vm578_vm0, nan, %v588_v1  ;;  %v692_v5 = vsel %vm578_vm0, nan, %v691_v2  ;;  %vm477_vm3 = vcmask 519552  }
  0xf7   :  { %v786_v23 = vpop.eup %785 }
  0xf8   :  { %v788_v51 = vpop.eup %787  ;;  %v360_v37 = vxor.u32 2147483648, %v786_v23 }
  0xf9   :  { %v357_v56 = vxor.u32 2147483648, %v788_v51 }
  0xfa   :  { %v464_v52 = vsel %vm462_vm7, %v360_v37, %v788_v51  ;;  %v361_v53 = vsel %vm359_vm12, %v360_v37, %v788_v51 }
  0xfb   :  { %v461_v40 = vsel %vm459_vm5, %v786_v23, %v357_v56  ;;  %v358_v55 = vsel %vm356_vm11, %v786_v23, %v357_v56  ;;  %vm703_vm5 = vcmask 781952  }
  0xfc   :  { %v465_v59 = vsel %vm458_vm4, %v461_v40, %v464_v52  ;;  %v362_v60 = vsel %vm355_vm10, %v358_v55, %v361_v53  ;;  %vm697_vm4 = vcmask 650752  }
  0xfd   :  { %v466_v62 = vsel %vm352_vm13, nan, %v465_v59  ;;  %v363_v63 = vsel %vm352_vm13, nan, %v362_v60 }
  0xfe   :  { %474 = vrot.lane.b32.xlu0 %v466_v62, %s848_s1  ;;  %468 = vrot.lane.b32.xlu1 %v363_v63, %s849_s23 }
 0x102   :  { %700 = vrot.lane.b32.xlu0 %v589_v35, %s850_s24  ;;  %694 = vrot.lane.b32.xlu1 %v692_v5, %s851_s25 }
 0x162   :  { %v249_v20 = vpop.permute.xlu1 %248 }
 0x163   :  { %252 = vst.msk [vmem:[#allocation5] sm:$0xf] %vm251_vm1, %v249_v20 }
 0x170   :  { %v475_v7 = vpop.permute.xlu0 %474  ;;  %v469_v8 = vpop.permute.xlu1 %468 }
 0x171   :  { %472 = vst.msk [vmem:[#allocation5] sm:$0xf] %vm471_vm2, %v469_v8 }
 0x172   :  { %478 = vst.msk [vmem:[#allocation5] sm:$0xf] %vm477_vm3, %v475_v7 }
 0x174   :  { %v701_v9 = vpop.permute.xlu0 %700  ;;  %v695_v12 = vpop.permute.xlu1 %694 }
 0x175   :  { %698 = vst.msk [vmem:[#allocation5] sm:$0xf] %vm697_vm4, %v695_v12 }
 0x176   :  { %704 = vst.msk [vmem:[#allocation5] sm:$0xf] %vm703_vm5, %v701_v9 }
 0x177   :  { %822 = shalt.err (!%p819_p12)
}
 0x178   :  { %s823_s3 = scalar_lea.hbm %s1075_s2, 64 }
 0x179   :  { %p824_p13 = scmp.ne.s32.totalorder %s1075_s2, %s823_s3  ;;  %p827_p0 = scmp.lt.u32.totalorder %s823_s3, %s1075_s2 }
 0x17b   :  { %p829_p1 = pnand %p827_p0, %p824_p13 }
 0x17d   :  { %832 = shalt.err (!%p829_p1)
}
 0x17e   :  { %714 = dma.vmem_to_hbm [thread:$0]  %s712_s27, 64, %s1075_s2, [#allocation4]  }
 0x17f   :  { %835 = dma.done.wait [#allocation4], 64  }
 0x180   :  { %836 = vsyncadd [#allocation4], 4294967232 }
 0x181   :  { %718 = vsyncpa [#allocation3], 1 }
 0x182   :  { %719 = vsyncpa [#allocation4], 1 }

</bundles_post_ra>
